<compile_context>
chip_gen: v7x
topology: tpu7x:2x2x1
jax: 0.10.0
libtpu: 0.0.40
codegen_flags: <defaults>
</compile_context>

<pallas_src>
import jax
import jax.numpy as jnp
from jax.experimental import pallas as pl
from jax.experimental.pallas import tpu as pltpu


def siamese_kernel(e1_ref, e2_ref,
                   w1_ref, b1_ref,
                   w2_ref, b2_ref,
                   w3_ref, b3_ref,
                   out_ref):
    # combined = |emb1 - emb2| in the streamed dtype (bf16-native VPU on
    # v6e/v7x when the producer emits bf16; f32 otherwise), cast once to the
    # weight dtype so the matmuls take the MXU path with f32 accumulation.
    diff = jnp.abs(e1_ref[...] - e2_ref[...])
    x = diff.astype(w1_ref.dtype)

    # fc1 + ReLU   (MXU, f32 accumulate; bias broadcast fused)
    h1 = jnp.dot(x, w1_ref[...], preferred_element_type=jnp.float32)
    h1 = jnp.maximum(h1 + b1_ref[...], 0.0)

    # fc2 + ReLU
    h2 = jnp.dot(h1.astype(w2_ref.dtype), w2_ref[...],
                 preferred_element_type=jnp.float32)
    h2 = jnp.maximum(h2 + b2_ref[...], 0.0)

    # fc3 (64 -> 1) + sigmoid.  w3 is stored as a (1, 64) row; contracting the
    # feature axis of h2 against it yields the logits directly as a lane-dense
    # (1, tile_b) row: no (tile_b, 1) column, no masked single-lane stores.
    logit = jax.lax.dot_general(
        w3_ref[...], h2.astype(w3_ref.dtype),
        dimension_numbers=(((1,), (1,)), ((), ())),
        preferred_element_type=jnp.float32)           # (1, tile_b)
    logit = logit + b3_ref[...]                       # (1, 1) broadcast
    out_ref[...] = jax.nn.sigmoid(logit).astype(out_ref.dtype)


def _round_up(x, m):
    return ((x + m - 1) // m) * m


def _full_spec(shape):
    n = len(shape)
    return pl.BlockSpec(shape, lambda i, _n=n: (0,) * _n)


def _vmem_budget_bytes():
    # ~75% of per-core VMEM: ~48 MiB on v7x (64 MiB), ~96 MiB on v5e/v6e (128 MiB).
    try:
        cap = int(pltpu.get_tpu_info().vmem_capacity_bytes)
    except Exception:
        cap = 64 * 1024 * 1024          # conservative v7x fallback
    return max(32 * 1024 * 1024, int(cap * 0.75))


def _choose_tile_b(B, D, itemsize, budget):
    """Pick the batch tile from the VMEM budget (scale with D, 128-aligned)."""
    def need(t):
        # 2 streams x double buffer + double-buffered (1, t) f32 output row
        # + ~2 MiB internal/compiler scratch headroom.
        return 2 * 2 * t * D * itemsize + 2 * t * 4 + (2 << 20)

    # Target ~2 MiB per embedding block per buffer; clamp to [256, 2048].
    t = (2 << 20) // max(D * itemsize, 1)
    t = _round_up(max(256, min(2048, t)), 128)
    # Ensure >= 2 balanced tiles when the batch allows (v7x has 2 TensorCores).
    if B > t:
        t = max(128, min(t, _round_up(pl.cdiv(B, 2), 128)))
    # Small batch: a single tile covering the (padded) batch.
    if t >= B:
        t = _round_up(B, 128 if B >= 128 else 8)
    # Shrink (halve) until the double-buffered working set fits the budget.
    floor = 128 if t > 128 else 8
    while t > floor and need(t) > budget:
        t = max(floor, _round_up(t // 2, floor))
    return t


def siamese_forward(embedding1, embedding2, params, *, tile_b=None):
    """embedding1/2: [B, ...] arrays (flattened to [B, D]).  Returns [B, 1] float32."""
    emb1 = embedding1.reshape(embedding1.shape[0], -1)
    emb2 = embedding2.reshape(embedding2.shape[0], -1)
    B, D = emb1.shape
    w1, b1, w2, b2, w3, b3 = params
    itemsize = emb1.dtype.itemsize

    budget = _vmem_budget_bytes()
    if tile_b is None:
        tile_b = _choose_tile_b(B, D, itemsize, budget)
    else:
        # Explicit override (tests): keep 8-aligned and no larger than the batch.
        tile_b = min(_round_up(tile_b, 8), _round_up(B, 8))

    num_tiles = pl.cdiv(B, tile_b)
    b_pad = num_tiles * tile_b
    if b_pad != B:
        emb1 = jnp.pad(emb1, ((0, b_pad - B), (0, 0)))
        emb2 = jnp.pad(emb2, ((0, b_pad - B), (0, 0)))

    w_bytes = sum(int(a.size) * a.dtype.itemsize for a in params)
    # VMEM actually requested: 2 streams x double buffer + resident weights
    # + double-buffered output row + scratch headroom.
    need = 2 * 2 * tile_b * D * itemsize + w_bytes + 2 * tile_b * 4 + (2 << 20)
    vmem_limit = int(min(max(need, 16 * 1024 * 1024), budget))

    cost = pl.CostEstimate(
        flops=int(2 * b_pad * (D * 128 + 128 * 64 + 64)),
        transcendentals=int(b_pad),                      # sigmoid exp
        bytes_accessed=int(2 * b_pad * D * itemsize + w_bytes + b_pad * 4))

    out_slab = pl.pallas_call(
        siamese_kernel,
        out_shape=jax.ShapeDtypeStruct((num_tiles, tile_b), jnp.float32),
        grid_spec=pltpu.PrefetchScalarGridSpec(
            num_scalar_prefetch=0,
            grid=(num_tiles,),
            in_specs=[
                pl.BlockSpec((tile_b, D), lambda i: (i, 0)),   # emb1 (streamed)
                pl.BlockSpec((tile_b, D), lambda i: (i, 0)),   # emb2 (streamed)
                _full_spec(w1.shape), _full_spec(b1.shape),    # fc1 (VMEM resident)
                _full_spec(w2.shape), _full_spec(b2.shape),    # fc2 (VMEM resident)
                _full_spec(w3.shape), _full_spec(b3.shape),    # fc3 (VMEM resident)
            ],
            # Lane-dense output: one (1, tile_b) logit row per grid step.
            out_specs=pl.BlockSpec((1, tile_b), lambda i: (i, 0)),
        ),
        compiler_params=pltpu.CompilerParams(
            dimension_semantics=("parallel",),
            vmem_limit_bytes=vmem_limit),
        cost_estimate=cost,
    )(emb1, emb2, w1, b1, w2, b2, w3, b3)

    # Layout plumbing back to the module's (B, 1) output (free in the wrapper).
    return out_slab.reshape(b_pad, 1)[:B]


def init_params(key, embedding_dim, *, weight_dtype=jnp.bfloat16):
    """PyTorch nn.Linear-style init (U[-1/sqrt(fan_in), +1/sqrt(fan_in)]).

    Weights are stored transposed vs. PyTorch ([in, out]) so layers are x @ W + b;
    fc3's weight is kept as a (1, 64) row.  Matmul weights are stored in bf16
    (accumulation stays f32 in-kernel); biases stay f32.
    """
    layer_dims = [(embedding_dim, 128), (128, 64), (64, 1)]
    params = []
    for i, (fan_in, fan_out) in enumerate(layer_dims):
        kw, kb = jax.random.split(jax.random.fold_in(key, i))
        bound = 1.0 / float(fan_in) ** 0.5
        w = jax.random.uniform(kw, (fan_in, fan_out), jnp.float32, -bound, bound)
        b = jax.random.uniform(kb, (1, fan_out), jnp.float32, -bound, bound)
        if fan_out == 1:
            w = w.T                      # fc3 stored as a (1, 64) row
        params += [w.astype(weight_dtype), b]
    return tuple(params)


def reference_forward(emb1, emb2, params):
    """Pure-JAX f32 reference matching the PyTorch forward."""
    w1, b1, w2, b2, w3, b3 = params
    x = jnp.abs(emb1.astype(jnp.float32) - emb2.astype(jnp.float32))
    h1 = jax.nn.relu(x @ w1.astype(jnp.float32) + b1)
    h2 = jax.nn.relu(h1 @ w2.astype(jnp.float32) + b2)
    logit = h2 @ w3.astype(jnp.float32).T + b3
    return jax.nn.sigmoid(logit)


if __name__ == "__main__":
    key = jax.random.PRNGKey(0)
    B, D = 50, 64  # batch, embedding_dim (small demo shapes)

    k1, k2, kp = jax.random.split(key, 3)
    emb1 = jax.random.normal(k1, (B, D), jnp.float32)
    emb2 = jax.random.normal(k2, (B, D), jnp.float32)
    params = init_params(kp, D)

    ref = reference_forward(emb1, emb2, params)

    # Auto-sized tile: single grid step at this small batch, batch padded to tile.
    out_auto = jax.block_until_ready(siamese_forward(emb1, emb2, params))
    # Explicit small tile: exercises the multi-step grid + lane-dense slab path.
    out_small = jax.block_until_ready(siamese_forward(emb1, emb2, params, tile_b=16))
    # bf16 embedding streaming path (half the HBM bytes when producers emit bf16).
    out_bf16 = jax.block_until_ready(
        siamese_forward(emb1.astype(jnp.bfloat16), emb2.astype(jnp.bfloat16), params))

    assert out_auto.shape == (B, 1) and out_small.shape == (B, 1)
    # bf16 matmul operands with f32 accumulation: compare loosely vs. f32 reference.
    assert jnp.allclose(out_auto, ref, atol=2e-2, rtol=2e-2)
    assert jnp.allclose(out_small, ref, atol=2e-2, rtol=2e-2)
    assert jnp.allclose(out_bf16, ref, atol=5e-2, rtol=5e-2)
    # Tiling must not change per-row results.
    assert jnp.allclose(out_auto, out_small, atol=1e-6, rtol=1e-6)
    print("KERNEL_OK")
</pallas_src>

<mosaic_0001>
module attributes {stable_mosaic.version = 11 : i64} {
  func.func @siamese_kernel(%arg0: i32, %arg1: memref<56x64xf32, #tpu.memory_space<vmem>>, %arg2: memref<56x64xf32, #tpu.memory_space<vmem>>, %arg3: memref<64x128xbf16, #tpu.memory_space<vmem>>, %arg4: memref<1x128xf32, #tpu.memory_space<vmem>>, %arg5: memref<128x64xbf16, #tpu.memory_space<vmem>>, %arg6: memref<1x64xf32, #tpu.memory_space<vmem>>, %arg7: memref<1x64xbf16, #tpu.memory_space<vmem>>, %arg8: memref<1x1xf32, #tpu.memory_space<vmem>>, %arg9: memref<1x56xf32, #tpu.memory_space<vmem>>) attributes {dimension_semantics = [#tpu.dimension_semantics<parallel>], iteration_bounds = array<i64: 1>, scalar_prefetch = 0 : i64, scratch_operands = 0 : i64, tpu.core_type = #tpu.core_type<tc>, window_params = [{transform_indices = @transform_0, window_bounds = array<i64: 56, 64>}, {transform_indices = @transform_1, window_bounds = array<i64: 56, 64>}, {pipeline_mode = #tpu.pipeline_mode<synchronous>, transform_indices = @transform_2, window_bounds = array<i64: 64, 128>}, {pipeline_mode = #tpu.pipeline_mode<synchronous>, transform_indices = @transform_3, window_bounds = array<i64: 1, 128>}, {pipeline_mode = #tpu.pipeline_mode<synchronous>, transform_indices = @transform_4, window_bounds = array<i64: 128, 64>}, {pipeline_mode = #tpu.pipeline_mode<synchronous>, transform_indices = @transform_5, window_bounds = array<i64: 1, 64>}, {pipeline_mode = #tpu.pipeline_mode<synchronous>, transform_indices = @transform_6, window_bounds = array<i64: 1, 64>}, {pipeline_mode = #tpu.pipeline_mode<synchronous>, transform_indices = @transform_7, window_bounds = array<i64: 1, 1>}, {transform_indices = @transform_8, window_bounds = array<i64: 1, 56>}]} {
    %c0 = arith.constant 0 : index
    %c0_0 = arith.constant 0 : index
    %0 = vector.load %arg1[%c0, %c0_0] : memref<56x64xf32, #tpu.memory_space<vmem>>, vector<56x64xf32>
    %c0_1 = arith.constant 0 : index
    %c0_2 = arith.constant 0 : index
    %1 = vector.load %arg2[%c0_1, %c0_2] : memref<56x64xf32, #tpu.memory_space<vmem>>, vector<56x64xf32>
    %2 = arith.subf %0, %1 : vector<56x64xf32>
    %3 = math.absf %2 : vector<56x64xf32>
    %4 = arith.truncf %3 : vector<56x64xf32> to vector<56x64xbf16>
    %c0_3 = arith.constant 0 : index
    %c0_4 = arith.constant 0 : index
    %5 = vector.load %arg3[%c0_3, %c0_4] : memref<64x128xbf16, #tpu.memory_space<vmem>>, vector<64x128xbf16>
    %cst = arith.constant dense<0.000000e+00> : vector<56x128xf32>
    %6 = tpu.matmul %4, %5, %cst {dimension_numbers = #tpu.dot_dimension_numbers<[1], [0], [0], [1], [0, 0, 1, 1], [], []>} : vector<56x64xbf16>, vector<64x128xbf16>, vector<56x128xf32> -> vector<56x128xf32>
    %c0_5 = arith.constant 0 : index
    %c0_6 = arith.constant 0 : index
    %7 = vector.load %arg4[%c0_5, %c0_6] : memref<1x128xf32, #tpu.memory_space<vmem>>, vector<1x128xf32>
    %8 = vector.broadcast %7 : vector<1x128xf32> to vector<56x128xf32>
    %9 = arith.addf %6, %8 : vector<56x128xf32>
    %cst_7 = arith.constant 0.000000e+00 : f32
    %10 = vector.broadcast %cst_7 : f32 to vector<56x128xf32>
    %11 = arith.maximumf %9, %10 : vector<56x128xf32>
    %12 = arith.truncf %11 : vector<56x128xf32> to vector<56x128xbf16>
    %c0_8 = arith.constant 0 : index
    %c0_9 = arith.constant 0 : index
    %13 = vector.load %arg5[%c0_8, %c0_9] : memref<128x64xbf16, #tpu.memory_space<vmem>>, vector<128x64xbf16>
    %cst_10 = arith.constant dense<0.000000e+00> : vector<56x64xf32>
    %14 = tpu.matmul %12, %13, %cst_10 {dimension_numbers = #tpu.dot_dimension_numbers<[1], [0], [0], [1], [0, 0, 1, 1], [], []>} : vector<56x128xbf16>, vector<128x64xbf16>, vector<56x64xf32> -> vector<56x64xf32>
    %c0_11 = arith.constant 0 : index
    %c0_12 = arith.constant 0 : index
    %15 = vector.load %arg6[%c0_11, %c0_12] : memref<1x64xf32, #tpu.memory_space<vmem>>, vector<1x64xf32>
    %16 = vector.broadcast %15 : vector<1x64xf32> to vector<56x64xf32>
    %17 = arith.addf %14, %16 : vector<56x64xf32>
    %cst_13 = arith.constant 0.000000e+00 : f32
    %18 = vector.broadcast %cst_13 : f32 to vector<56x64xf32>
    %19 = arith.maximumf %17, %18 : vector<56x64xf32>
    %c0_14 = arith.constant 0 : index
    %c0_15 = arith.constant 0 : index
    %20 = vector.load %arg7[%c0_14, %c0_15] : memref<1x64xbf16, #tpu.memory_space<vmem>>, vector<1x64xbf16>
    %21 = arith.truncf %19 : vector<56x64xf32> to vector<56x64xbf16>
    %cst_16 = arith.constant dense<0.000000e+00> : vector<1x56xf32>
    %22 = tpu.matmul %20, %21, %cst_16 {dimension_numbers = #tpu.dot_dimension_numbers<[1], [1], [0], [0], [0, 0, 1, 0], [], []>} : vector<1x64xbf16>, vector<56x64xbf16>, vector<1x56xf32> -> vector<1x56xf32>
    %c0_17 = arith.constant 0 : index
    %c0_18 = arith.constant 0 : index
    %23 = vector.load %arg8[%c0_17, %c0_18] : memref<1x1xf32, #tpu.memory_space<vmem>>, vector<1x1xf32>
    %24 = vector.broadcast %23 : vector<1x1xf32> to vector<1x56xf32>
    %25 = arith.addf %22, %24 : vector<1x56xf32>
    %26 = arith.negf %25 : vector<1x56xf32>
    %27 = math.exp %26 : vector<1x56xf32>
    %cst_19 = arith.constant 1.000000e+00 : f32
    %28 = vector.broadcast %cst_19 : f32 to vector<1x56xf32>
    %29 = arith.addf %28, %27 : vector<1x56xf32>
    %30 = arith.divf %28, %29 : vector<1x56xf32>
    %c0_20 = arith.constant 0 : index
    %c0_21 = arith.constant 0 : index
    %31 = vector.load %arg9[%c0_20, %c0_21] : memref<1x56xf32, #tpu.memory_space<vmem>>, vector<1x56xf32>
    tpu.vector_store %arg9[%c0_20, %c0_21], %30 {strides = array<i32>} : memref<1x56xf32, #tpu.memory_space<vmem>>, vector<1x56xf32>,
    return
  }
  func.func @transform_0(%arg0: i32) -> (i32, i32) {
    %c0_i32 = arith.constant 0 : i32
    %c0_i32_0 = arith.constant 0 : i32
    return %arg0, %c0_i32 : i32, i32
  }
  func.func @transform_1(%arg0: i32) -> (i32, i32) {
    %c0_i32 = arith.constant 0 : i32
    %c0_i32_0 = arith.constant 0 : i32
    return %arg0, %c0_i32 : i32, i32
  }
  func.func @transform_2(%arg0: i32) -> (i32, i32) {
    %c0_i32 = arith.constant 0 : i32
    %c0_i32_0 = arith.constant 0 : i32
    %c0_i32_1 = arith.constant 0 : i32
    return %c0_i32, %c0_i32_0 : i32, i32
  }
  func.func @transform_3(%arg0: i32) -> (i32, i32) {
    %c0_i32 = arith.constant 0 : i32
    %c0_i32_0 = arith.constant 0 : i32
    %c0_i32_1 = arith.constant 0 : i32
    return %c0_i32, %c0_i32_0 : i32, i32
  }
  func.func @transform_4(%arg0: i32) -> (i32, i32) {
    %c0_i32 = arith.constant 0 : i32
    %c0_i32_0 = arith.constant 0 : i32
    %c0_i32_1 = arith.constant 0 : i32
    return %c0_i32, %c0_i32_0 : i32, i32
  }
  func.func @transform_5(%arg0: i32) -> (i32, i32) {
    %c0_i32 = arith.constant 0 : i32
    %c0_i32_0 = arith.constant 0 : i32
    %c0_i32_1 = arith.constant 0 : i32
    return %c0_i32, %c0_i32_0 : i32, i32
  }
  func.func @transform_6(%arg0: i32) -> (i32, i32) {
    %c0_i32 = arith.constant 0 : i32
    %c0_i32_0 = arith.constant 0 : i32
    %c0_i32_1 = arith.constant 0 : i32
    return %c0_i32, %c0_i32_0 : i32, i32
  }
  func.func @transform_7(%arg0: i32) -> (i32, i32) {
    %c0_i32 = arith.constant 0 : i32
    %c0_i32_0 = arith.constant 0 : i32
    %c0_i32_1 = arith.constant 0 : i32
    return %c0_i32, %c0_i32_0 : i32, i32
  }
  func.func @transform_8(%arg0: i32) -> (i32, i32) {
    %c0_i32 = arith.constant 0 : i32
    %c0_i32_0 = arith.constant 0 : i32
    return %arg0, %c0_i32 : i32, i32
  }
}

</mosaic_0001>

<bundles_post_ra>
// kernel: tpu_custom_call.1
= control target key start
LH: loop header
LB: loop body
LE: loop exit
PB: predicated region body
PF: predicated region fallthrough
CT: control target
= control target key end

     0   :  { %s764_s0 = inlined_call_operand.vmem [shape: f32[56,64], index: 0, kind: input, shape index: {}]   ;;  %s765_s1 = inlined_call_operand.hbm [shape: f32[56,64], index: 1, kind: input, shape index: {}]   ;;  %s766_s2 = inlined_call_operand.vmem [shape: bf16[64,128], index: 2, kind: input, shape index: {}]   ;;  %s767_s3 = inlined_call_operand.vmem [shape: f32[1,128], index: 3, kind: input, shape index: {}]   ;;  %s768_s4 = inlined_call_operand.vmem [shape: bf16[128,64], index: 4, kind: input, shape index: {}]   ;;  %s769_s5 = inlined_call_operand.vmem [shape: f32[1,64], index: 5, kind: input, shape index: {}]   ;;  %s770_s6 = inlined_call_operand.vmem [shape: bf16[1,64], index: 6, kind: input, shape index: {}]   ;;  %s771_s7 = inlined_call_operand.<no memory space> [shape: f32[1,1], index: 7, kind: input, shape index: {}]   ;;  %s772_s8 = inlined_call_operand.hbm [shape: f32[1,56], index: 8, kind: output, shape index: {}]  }
   0x1   :  { %v13_v0 = vstv %s771_s7 }
   0x2   :  { %14 = vst [vmem:[#allocation2] sm:$0x1] %v13_v0 }
   0x3   :  { %15 = vsyncpa [#allocation4], 0 }
   0x4   :  { %16 = vsyncpa [#allocation5], 0  ;;  %s610_s29 = smov [#allocation3]   ;;  %s562_s11 = scalar_lea.hbm %s765_s1, 896 }
   0x5   :  { %s24_s30 = sshll.u32 %s610_s29, 4  ;;  %p563_p0 = scmp.ne.s32.totalorder %s765_s1, %s562_s11  ;;  %s25_s30 = int_to_ptr.vmem [resolvable:$true] %s24_s30 }
   0x6   :  { %p566_p1 = scmp.lt.u32.totalorder %s562_s11, %s765_s1 }
   0x8   :  { %p568_p2 = pnand %p566_p1, %p563_p0 }
   0xa   :  { %571 = shalt.err (!%p568_p2)
}
   0xb   :  { %s572_s7 = scalar_lea.vmem %s25_s30, 896  ;;  %p577_p4 = scmp.lt.s32.totalorder %s25_s30, %s25_s30 }
   0xc   :  { %p573_p3 = scmp.ne.s32.totalorder %s25_s30, %s572_s7  ;;  %p578_p5 = scmp.lt.s32.totalorder %s572_s7, %s572_s7 }
   0xe   :  { %p579_p6 = por %p578_p5, %p577_p4 }
  0x10   :  { %p580_p7 = pnand %p579_p6, %p573_p3 }
  0x12   :  { %583 = shalt.err (!%p580_p7)
}
  0x13   :  { %s611_s16 = smov 128   ;;  %s612_s17 = smov 8  }
  0x14   :  { %30 = dma.hbm_to_vmem [thread:$0]  %s765_s1, 896, %s25_s30, [#allocation4], %s611_s16, %s611_s16, %s612_s17  }
  0x15   :  { %606 = dma.done.wait [#allocation4], 896  }
  0x16   :  { %607 = vsyncadd [#allocation4], 4294966400  ;;  %v546_v1 = vld [vmem:[%s766_s2] sm:$0xff]   ;;  %v547_v2 = vld [vmem:[%s766_s2 + $0x8] sm:$0xff]   ;;  %vm118_vm0 = vcmask 523264   ;;  %vm614_vm1 = vmmov 0  }
  0x17   :  { %486 = vmatprep.subr.bf16.mxu0 %v546_v1  ;;  %v548_v3 = vld [vmem:[%s766_s2 + $0x10] sm:$0xff]   ;;  %v47_v4 = vld [vmem:[%s764_s0] sm:$0xff]  ;;  %v48_v5 = vld [vmem:[%s764_s0 + $0x8] sm:$0xff]  ;;  %s616_s12 = smov [#allocation6]   ;;  %vm424_vm2 = vcmask 450560  }
  0x18   :  { %487 = vmatpush3.bf16.msra.mxu0 %v546_v1  ;;  %v54_v6 = vld [vmem:[#allocation3] sm:$0xff]  ;;  %v55_v7 = vld [vmem:[#allocation3 + $0x8] sm:$0xff]  ;;  %v50_v10 = vld [vmem:[%s764_s0 + $0x18] sm:$0xff]  ;;  %s432_s13 = sshll.u32 %s616_s12, 4  ;;  %s433_s13 = int_to_ptr.vmem [resolvable:$true] %s432_s13 }
  0x19   :  { %488 = vmatprep.subr.bf16.mxu0 %v547_v2  ;;  %v61_v8 = vsub.f32 %v47_v4, %v54_v6  ;;  %v49_v9 = vld [vmem:[%s764_s0 + $0x10] sm:$0xff]  ;;  %v62_v11 = vsub.f32 %v48_v5, %v55_v7  ;;  %v57_v13 = vld [vmem:[#allocation3 + $0x18] sm:$0xff]  ;;  %v52_v18 = vld [vmem:[%s764_s0 + $0x28] sm:$0xff]  ;;  %s588_s14 = scalar_lea.vmem %s433_s13, 32  ;;  %p589_p9 = scmp.lt.s32.totalorder %s433_s13, %s433_s13 }
  0x1a   :  { %v56_v12 = vld [vmem:[#allocation3 + $0x10] sm:$0xff]  ;;  %v51_v14 = vld [vmem:[%s764_s0 + $0x20] sm:$0xff]  ;;  %v64_v17 = vsub.f32 %v50_v10, %v57_v13  ;;  %v59_v20 = vld [vmem:[#allocation3 + $0x28] sm:$0xff]  ;;  %v615_v10 = vmov 0  }
  0x1b   :  { %v68_v15 = vand.u32 2147483647, %v61_v8  ;;  %v63_v16 = vsub.f32 %v49_v9, %v56_v12  ;;  %v58_v19 = vld [vmem:[#allocation3 + $0x20] sm:$0xff]  ;;  %v549_v21 = vld [vmem:[%s766_s2 + $0x18] sm:$0xff]   ;;  %v69_v22 = vand.u32 2147483647, %v62_v11  ;;  %v66_v24 = vsub.f32 %v52_v18, %v59_v20  ;;  %545 = vset.pattern.permute.xlu0 %v615_v10 }
  0x1c   :  { %489 = vmatpush3.bf16.msra.mxu0 %v547_v2  ;;  %v65_v23 = vsub.f32 %v51_v14, %v58_v19  ;;  %v71_v26 = vand.u32 2147483647, %v64_v17  ;;  %v53_v27 = vld [vmem:[%s764_s0 + $0x30] sm:$0xff]  ;;  %v550_v32 = vld [vmem:[%s768_s4] sm:$0xff]   ;;  %v551_v33 = vld [vmem:[%s768_s4 + $0x8] sm:$0xff]   ;;  %v613_v8 = vmov 0.0  }
  0x1d   :  { %490 = vmatprep.subr.bf16.mxu0 %v548_v3  ;;  %v70_v25 = vand.u32 2147483647, %v63_v16  ;;  %v75_v28 = vpack.c.bf16 %v69_v22, %v68_v15  ;;  %v73_v30 = vand.u32 2147483647, %v66_v24  ;;  %v60_v31 = vld [vmem:[#allocation3 + $0x30] sm:$0xff]  ;;  %502 = vmatprep.subr.bf16.mxu1 %v550_v32  ;;  %v554_v41 = vld [vmem:[%s768_s4 + $0x20] sm:$0xff]  }
  0x1e   :  { %v72_v29 = vand.u32 2147483647, %v65_v23  ;;  %v67_v35 = vsub.f32 %v53_v27, %v60_v31  ;;  %503 = vmatpush3.bf16.msra.mxu1 %v550_v32  ;;  %v552_v37 = vld [vmem:[%s768_s4 + $0x10] sm:$0xff]   ;;  %v553_v39 = vld [vmem:[%s768_s4 + $0x18] sm:$0xff]   ;;  %v555_v42 = vld [vmem:[%s768_s4 + $0x28] sm:$0xff]  }
  0x1f   :  { %494 = vmatprep.mubr.msk.bf16.mxu0 %vm118_vm0, %v75_v28  ;;  %v76_v34 = vpack.c.bf16 %v71_v26, %v70_v25  ;;  %504 = vmatprep.subr.bf16.mxu1 %v551_v33  ;;  %v556_v43 = vld [vmem:[%s768_s4 + $0x30] sm:$0xff]   ;;  %v557_v44 = vld [vmem:[%s768_s4 + $0x38] sm:$0xff]   ;;  %v441_v45 = vld [vmem:[%s767_s3] ss:$0 sm:$0xff] }
  0x20   :  { %491 = vmatpush3.bf16.msra.mxu0 %v548_v3  ;;  %v77_v36 = vpack.c.bf16 %v73_v30, %v72_v29  ;;  %v74_v38 = vand.u32 2147483647, %v67_v35  ;;  %v353_v9 = vld [vmem:[#allocation2] sm:$0x1] }
  0x21   :  { %492 = vmatprep.subr.bf16.mxu0 %v549_v21  ;;  %356 = vperm.xlu0 %545, %v353_v9   ;;  %v450_v11 = vld [vmem:[%s769_s5] ss:$0 sm:$0xff] }
  0x22   :  { %505 = vmatpush3.bf16.msra.mxu1 %v551_v33  ;;  %v78_v40 = vpack.c.bf16 %v74_v38, %v74_v38 }
  0x23   :  { %506 = vmatprep.subr.bf16.mxu1 %v552_v37 }
  0x24   :  { %493 = vmatpush3.bf16.msra.mxu0 %v549_v21 }
  0x25   :  { %526 = vmatprep.subr.bf16.mxu0 %v613_v8 }
  0x26   :  { %507 = vmatpush3.bf16.msra.mxu1 %v552_v37 }
  0x27   :  { %495 = vmatmul.mubr.msk.bf16.vlgmr.msra.gmra.mrb[0].mxu0 %vm118_vm0, %v76_v34  ;;  %508 = vmatprep.subr.bf16.mxu1 %v553_v39 }
  0x28   :  { %498 = vmatprep.mubr.msk.bf16.mxu0 %vm118_vm0, %v77_v36 }
  0x2a   :  { %509 = vmatpush3.bf16.msra.mxu1 %v553_v39 }
  0x2b   :  { %510 = vmatprep.subr.bf16.mxu1 %v554_v41 }
  0x2e   :  { %511 = vmatpush3.bf16.msra.mxu1 %v554_v41 }
  0x2f   :  { %499 = vmatmul.mubr.msk.bf16.gmra.mrb[4].mxu0 %vm118_vm0, %v78_v40  ;;  %512 = vmatprep.subr.bf16.mxu1 %v555_v42 }
  0x30   :  { %534 = vmatprep.mubr.msk.bf16.mxu0 %vm614_vm1, %v613_v8 }
  0x32   :  { %513 = vmatpush3.bf16.msra.mxu1 %v555_v42  ;;  %v348_v42 = vld [vmem:[%s770_s6] sm:$0x1]  ;;  %s584_s6 = scalar_lea.vmem %s433_s13, 16 }
  0x33   :  { %514 = vmatprep.subr.bf16.mxu1 %v556_v43  ;;  %p585_p8 = scmp.ne.s32.totalorder %s433_s13, %s584_s6  ;;  %p590_p10 = scmp.lt.s32.totalorder %s588_s14, %s584_s6 }
  0x35   :  { %p591_p11 = por %p590_p10, %p589_p9 }
  0x36   :  { %515 = vmatpush3.bf16.msra.mxu1 %v556_v43  ;;  %v359_v43 = vlaneseq }
  0x37   :  { %516 = vmatprep.subr.bf16.mxu1 %v557_v44  ;;  %p592_p12 = pnand %p591_p11, %p585_p8 }
  0x3a   :  { %517 = vmatpush3.bf16.msra.mxu1 %v557_v44  ;;  %v360_v44 = vshrl.u32 %v359_v43, 7 }
  0xfa   :  { %v496_v46 = vpop.f32.mrb[0].mxu0 }
  0xfb   :  { %v174_v47 = vadd.f32 %v496_v46, %v441_v45  ;;  %v165_v48 = vpop.f32.mrb[1].mxu0  ;;  %v357_v46 = vpop.permute.xlu0 %356 }
  0xfc   :  { %v166_v49 = vadd.f32 %v441_v45, %v165_v48  ;;  %v497_v50 = vpop.f32.mrb[2].mxu0 }
  0xfd   :  { %v177_v51 = vadd.f32 %v497_v50, %v441_v45  ;;  %v168_v52 = vpop.f32.mrb[3].mxu0  ;;  %v197_v54 = vmax.f32 %v174_v47, 0.0 }
  0xfe   :  { %v169_v53 = vadd.f32 %v441_v45, %v168_v52  ;;  %v195_v56 = vmax.f32 %v166_v49, 0.0 }
  0xff   :  { %v198_v55 = vmax.f32 %v177_v51, 0.0 }
 0x100   :  { %v196_v57 = vmax.f32 %v169_v53, 0.0 }
 0x101   :  { %v203_v58 = vpack.c.bf16 %v198_v55, %v197_v54 }
 0x102   :  { %v500_v59 = vpop.f32.mrb[4].mxu0  ;;  %v202_v60 = vpack.c.bf16 %v196_v57, %v195_v56 }
 0x103   :  { %v190_v61 = vadd.f32 %v500_v59, %v441_v45  ;;  %v181_v62 = vpop.f32.mrb[5].mxu0 }
 0x104   :  { %v182_v63 = vadd.f32 %v441_v45, %v181_v62  ;;  %518 = vmatprep.mubr.bf16.mxu1 %v202_v60  ;;  %v501_v0 = vpop.f32.mrb[6].mxu0 }
 0x105   :  { %v201_v1 = vmax.f32 %v190_v61, 0.0  ;;  %519 = vmatmul.mubr.bf16.vlgmr.msra.gmra.mrb[0].mxu1 %v203_v58  ;;  %v184_v2 = vpop.f32.mrb[7].mxu0 }
 0x106   :  { %v199_v3 = vmax.f32 %v182_v63, 0.0  ;;  %v185_v4 = vadd.f32 %v441_v45, %v184_v2  ;;  %v361_v45 = vsub.s32 0, %v360_v44 }
 0x107   :  { %v205_v6 = vpack.c.bf16 %v201_v1, %v201_v1 }
 0x108   :  { %v200_v5 = vmax.f32 %v185_v4, 0.0  ;;  %v362_v47 = vrot.slane %v357_v46, %v361_v45 }
 0x10a   :  { %v204_v7 = vpack.c.bf16 %v200_v5, %v199_v3 }
 0x10c   :  { %522 = vmatprep.mubr.bf16.mxu1 %v204_v7 }
 0x10d   :  { %523 = vmatmul.mubr.bf16.gmra.mrb[4].mxu1 %v205_v6 }
 0x1d8   :  { %v520_v12 = vpop.f32.mrb[0].mxu1 }
 0x1d9   :  { %v320_v13 = vadd.f32 %v520_v12, %v450_v11  ;;  %v311_v14 = vpop.f32.mrb[1].mxu1 }
 0x1da   :  { %v312_v15 = vadd.f32 %v450_v11, %v311_v14  ;;  %v521_v16 = vpop.f32.mrb[2].mxu1 }
 0x1db   :  { %v323_v17 = vadd.f32 %v521_v16, %v450_v11  ;;  %v314_v18 = vpop.f32.mrb[3].mxu1  ;;  %v343_v20 = vmax.f32 %v320_v13, 0.0 }
 0x1dc   :  { %v315_v19 = vadd.f32 %v450_v11, %v314_v18  ;;  %v341_v22 = vmax.f32 %v312_v15, 0.0 }
 0x1dd   :  { %v344_v21 = vmax.f32 %v323_v17, 0.0 }
 0x1de   :  { %v342_v23 = vmax.f32 %v315_v19, 0.0 }
 0x1df   :  { %v350_v24 = vpack.c.bf16 %v344_v21, %v343_v20 }
 0x1e0   :  { %v349_v25 = vpack.c.bf16 %v342_v23, %v341_v22  ;;  %v524_v26 = vpop.f32.mrb[4].mxu1 }
 0x1e1   :  { %v327_v27 = vpop.f32.mrb[5].mxu1  ;;  %v370_v36 = vsel %vm118_vm0, %v350_v24, 0  ;;  %v336_v37 = vadd.f32 %v524_v26, %v450_v11 }
 0x1e2   :  { %v328_v28 = vadd.f32 %v450_v11, %v327_v27  ;;  %v525_v29 = vpop.f32.mrb[6].mxu1  ;;  %v367_v30 = vsel %vm118_vm0, %v349_v25, 0 }
 0x1e3   :  { %527 = vmatpush3.bf16.xpose.msra.mxu0 %v367_v30  ;;  %v330_v31 = vpop.f32.mrb[7].mxu1  ;;  %v347_v38 = vmax.f32 %v336_v37, 0.0 }
 0x1e4   :  { %v345_v32 = vmax.f32 %v328_v28, 0.0  ;;  %v331_v33 = vadd.f32 %v450_v11, %v330_v31  ;;  %528 = vmatprep.subr.bf16.mxu0 %v613_v8 }
 0x1e5   :  { %v352_v40 = vpack.c.bf16 %v347_v38, %v347_v38 }
 0x1e6   :  { %v346_v34 = vmax.f32 %v331_v33, 0.0 }
 0x1e7   :  { %v376_v41 = vsel %vm118_vm0, %v352_v40, 0 }
 0x1e8   :  { %v351_v35 = vpack.c.bf16 %v346_v34, %v345_v32 }
 0x1ea   :  { %v373_v39 = vsel %vm118_vm0, %v351_v35, 0 }
 0x1eb   :  { %529 = vmatpush3.bf16.xpose.msra.mxu0 %v370_v36 }
 0x1ec   :  { %530 = vmatprep.subr.bf16.mxu0 %v613_v8 }
 0x1f3   :  { %531 = vmatpush3.bf16.xpose.msra.mxu0 %v373_v39 }
 0x1f4   :  { %532 = vmatprep.subr.bf16.mxu0 %v613_v8 }
 0x1fb   :  { %533 = vmatpush3.bf16.xpose.msra.mxu0 %v376_v41 }
 0x202   :  { %535 = vmatmul.mubr.msk.bf16.vlgmr.msra.gmra.mrb[8].mxu0 %vm118_vm0, %v348_v42 }
 0x2d5   :  { %v412_v48 = vpop.f32.mrb[8].mxu0 }
 0x2d6   :  { %v413_v49 = vadd.f32 %v412_v48, %v362_v47  ;;  %v536_v50 = vpop.f32.mrb[9].mxu0 }
 0x2d7   :  { %v415_v51 = vpop.f32.mrb[10].mxu0 }
 0x2d8   :  { %v460_v52 = vmul.f32 -1.442695, %v413_v49  ;;  %v537_v53 = vpop.f32.mrb[11].mxu0 }
 0x2da   :  { %558 = vpow2.f32 %v460_v52 }
 0x2e4   :  { %v559_v54 = vpop.eup %558 }
 0x2e5   :  { %v421_v55 = vadd.f32 1.0, %v559_v54 }
 0x2e7   :  { %560 = vrcp.f32 %v421_v55 }
 0x2f1   :  { %v561_v56 = vpop.eup %560 }
 0x2f2   :  { %425 = vst.msk [vmem:[#allocation6] sm:$0x1] %vm424_vm2, %v561_v56 }
 0x2f3   :  { %595 = shalt.err (!%p592_p12)
}
 0x2f4   :  { %s596_s16 = scalar_lea.hbm %s772_s8, 16 }
 0x2f5   :  { %p597_p13 = scmp.ne.s32.totalorder %s772_s8, %s596_s16  ;;  %p600_p0 = scmp.lt.u32.totalorder %s596_s16, %s772_s8 }
 0x2f7   :  { %p602_p1 = pnand %p600_p0, %p597_p13 }
 0x2f9   :  { %605 = shalt.err (!%p602_p1)
}
 0x2fa   :  { %435 = dma.vmem_to_hbm [thread:$0]  %s433_s13, 16, %s772_s8, [#allocation5]  }
 0x2fb   :  { %608 = dma.done.wait [#allocation5], 16  }
 0x2fc   :  { %609 = vsyncadd [#allocation5], 4294967280 }
 0x2fd   :  { %439 = vsyncpa [#allocation4], 1 }
 0x2fe   :  { %440 = vsyncpa [#allocation5], 1 }

</bundles_post_ra>
